<compile_context>
chip_gen: v5e
topology: v5e:2x2
jax: 0.10.0
libtpu: 0.0.40
codegen_flags: <defaults>
</compile_context>

<pallas_src>
import jax
import jax.numpy as jnp
from jax.experimental import pallas as pl
from jax.experimental.pallas import tpu as pltpu


def _round_up(x, m):
    return (x + m - 1) // m * m


# ------------------------------ Pallas kernel -------------------------------

def objectiveness_head_kernel(p_ref, w1_ref, b1_ref, w2_ref, b2_ref, o_ref):
    """Whole head for one lane-tile of M = N*H*W pixels.

    Channels sit on sublanes, pixels on lanes, so both convs are single
    lane-dense MXU matmuls and the output store is compact.

      p_ref  : [KP, Mt] bf16   im2col patches^T, K = (ky,kx,cin)-major, zero-padded
      w1_ref : [CP, KP] bf16   conv1 weight^T (rows >= Cin are zero)
      b1_ref : [CP, 1]  f32    conv1 bias (zero-padded)
      w2_ref : [AP, CP] bf16   conv2 weight^T (rows >= A / cols >= Cin are zero)
      b2_ref : [AP, 1]  f32    conv2 bias (zero-padded)
      o_ref  : [AP, Mt] f32    out^T; wrapper slices the real A rows
    """
    # conv1 (3x3, pad=1) == one matmul over the padded im2col contraction.
    h = jnp.dot(w1_ref[...], p_ref[...], preferred_element_type=jnp.float32)
    h = jnp.maximum(h + b1_ref[...], 0.0)                      # bias + ReLU (f32)
    # conv2 (1x1) == second matmul; anchors stay on sublanes -> compact writeback.
    out = jnp.dot(w2_ref[...], h.astype(jnp.bfloat16),
                  preferred_element_type=jnp.float32)
    o_ref[...] = out + b2_ref[...]


# -------------------------------- JAX wrapper --------------------------------

def objectiveness_head_forward(params, x_nchw):
    N, Cin, H, W = x_nchw.shape
    A = params["b2"].shape[0]
    # Rearrange 'b (c p) h w -> b c h w p' with c = num_anchors  =>  p must be 1.
    assert params["w2"].shape[0] == A and params["w2"].shape[1] == Cin, \
        "conv2 must map in_channels -> num_anchors (p == 1 in the rearrange)"

    K = 9 * Cin
    KP = _round_up(max(K, 128), 128)     # im2col contraction, MXU-native lanes
    CP = _round_up(Cin, 8)               # hidden channels on sublanes
    AP = _round_up(A, 8)                 # anchors on sublanes
    M = N * H * W                        # batch folded into the pixel/lane axis

    # ---- im2col, transposed: patches^T[k, m], k = (ky,kx,cin), m = (n,h,w) ----
    xp = jnp.pad(x_nchw, ((0, 0), (0, 0), (1, 1), (1, 1)))      # pad=1 for 3x3
    wins = [xp[:, :, ky:ky + H, kx:kx + W]
            for ky in range(3) for kx in range(3)]              # 9 x [N,Cin,H,W]
    pt = jnp.transpose(jnp.stack(wins, 0), (0, 2, 1, 3, 4)).reshape(K, M)
    pt = jnp.pad(pt, ((0, KP - K), (0, 0))).astype(jnp.bfloat16)   # [KP, M]

    # ---- weights / biases: transposed, zero-padded, bf16 cast once (here) ----
    # torch OIHW [Cin,Cin,3,3] -> [cout, (ky,kx,cin)]
    w1 = jnp.transpose(params["w1"], (0, 2, 3, 1)).reshape(Cin, K)
    w1p = jnp.pad(w1, ((0, CP - Cin), (0, KP - K))).astype(jnp.bfloat16)
    b1p = jnp.pad(params["b1"].astype(jnp.float32), (0, CP - Cin)).reshape(CP, 1)
    w2 = params["w2"][:, :, 0, 0]                                # [A, Cin]
    w2p = jnp.pad(w2, ((0, AP - A), (0, CP - Cin))).astype(jnp.bfloat16)
    b2p = jnp.pad(params["b2"].astype(jnp.float32), (0, AP - A)).reshape(AP, 1)

    # ---- grid: pixels on lanes; 2 parallel lane-tiles feed both v7x TCs ----
    n_tiles = 2 if (M % 256 == 0) else 1
    Mt = M // n_tiles

    cost = pl.CostEstimate(
        flops=2 * M * (KP * CP + CP * AP),
        transcendentals=0,
        bytes_accessed=(KP * M + CP * KP + AP * CP) * 2 + (CP + AP) * 4 + AP * M * 4,
    )

    out_t = pl.pallas_call(
        objectiveness_head_kernel,
        out_shape=jax.ShapeDtypeStruct((AP, M), jnp.float32),
        grid=(n_tiles,),
        in_specs=[
            pl.BlockSpec((KP, Mt), lambda i: (0, i)),    # patches^T lane-tile
            pl.BlockSpec((CP, KP), lambda i: (0, 0)),    # weights stay resident
            pl.BlockSpec((CP, 1), lambda i: (0, 0)),
            pl.BlockSpec((AP, CP), lambda i: (0, 0)),
            pl.BlockSpec((AP, 1), lambda i: (0, 0)),
        ],
        out_specs=pl.BlockSpec((AP, Mt), lambda i: (0, i)),
        compiler_params=pltpu.CompilerParams(
            dimension_semantics=("parallel",)),
        cost_estimate=cost,
    )(pt, w1p, b1p, w2p, b2p)

    # ---- drop sublane padding, back to 'b c h w p' with p == 1 ----
    out = out_t.reshape(AP, N, H, W)[:A]                 # [A, N, H, W]
    out = jnp.transpose(out, (1, 0, 2, 3))               # [N, A, H, W]
    return out[..., None]                                # [N, A, H, W, 1]


# --------------------------------- reference ---------------------------------

def reference_forward(params, x_nchw):
    dn = ("NCHW", "OIHW", "NCHW")
    y = jax.lax.conv_general_dilated(x_nchw, params["w1"], (1, 1),
                                     ((1, 1), (1, 1)), dimension_numbers=dn)
    y = jax.nn.relu(y + params["b1"].reshape(1, -1, 1, 1))
    y = jax.lax.conv_general_dilated(y, params["w2"], (1, 1),
                                     ((0, 0), (0, 0)), dimension_numbers=dn)
    y = y + params["b2"].reshape(1, -1, 1, 1)
    N, C, H, W = y.shape
    A = params["b2"].shape[0]
    P = C // A
    return jnp.transpose(y.reshape(N, A, P, H, W), (0, 1, 3, 4, 2))


def init_params(key, in_channels, num_anchors):
    k1, k2, k3, k4 = jax.random.split(key, 4)
    return {
        "w1": 0.1 * jax.random.normal(k1, (in_channels, in_channels, 3, 3), jnp.float32),  # OIHW
        "b1": 0.1 * jax.random.normal(k2, (in_channels,), jnp.float32),
        "w2": 0.1 * jax.random.normal(k3, (num_anchors, in_channels, 1, 1), jnp.float32),  # OIHW
        "b2": 0.1 * jax.random.normal(k4, (num_anchors,), jnp.float32),
    }


# ------------------------------------ main -----------------------------------

if __name__ == "__main__":
    key = jax.random.PRNGKey(0)
    kx1, kp1, kx2, kp2 = jax.random.split(key, 4)

    fwd = jax.jit(objectiveness_head_forward)

    # Case 1: in_channels=4, num_anchors=3, x: [2, 4, 16, 16]
    N, Cin, H, W, A = 2, 4, 16, 16, 3
    x1 = jax.random.normal(kx1, (N, Cin, H, W), jnp.float32)
    p1 = init_params(kp1, Cin, A)
    out1 = jax.block_until_ready(fwd(p1, x1))
    ref1 = reference_forward(p1, x1)
    assert out1.shape == (N, A, H, W, 1), out1.shape
    err1 = float(jnp.max(jnp.abs(out1 - ref1)))

    # Case 2: in_channels=8, num_anchors=9, x: [2, 8, 16, 16]
    x2 = jax.random.normal(kx2, (2, 8, 16, 16), jnp.float32)
    p2 = init_params(kp2, 8, 9)
    out2 = jax.block_until_ready(fwd(p2, x2))
    ref2 = reference_forward(p2, x2)
    assert out2.shape == (2, 9, 16, 16, 1), out2.shape
    err2 = float(jnp.max(jnp.abs(out2 - ref2)))

    if not (bool(jnp.all(jnp.isfinite(out1))) and bool(jnp.all(jnp.isfinite(out2)))):
        raise SystemExit("non-finite output")
    if err1 > 5e-2 or err2 > 5e-2:
        raise SystemExit(f"mismatch vs reference: {err1:.2e}, {err2:.2e}")
    print("KERNEL_OK")
</pallas_src>

<mosaic_0001>
module attributes {stable_mosaic.version = 11 : i64} {
  func.func @objectiveness_head_kernel(%arg0: i32, %arg1: memref<128x256xbf16, #tpu.memory_space<vmem>>, %arg2: memref<8x128xbf16, #tpu.memory_space<vmem>>, %arg3: memref<8x1xf32, #tpu.memory_space<vmem>>, %arg4: memref<8x8xbf16, #tpu.memory_space<vmem>>, %arg5: memref<8x1xf32, #tpu.memory_space<vmem>>, %arg6: memref<8x256xf32, #tpu.memory_space<vmem>>) attributes {dimension_semantics = [#tpu.dimension_semantics<parallel>], iteration_bounds = array<i64: 2>, scalar_prefetch = 0 : i64, scratch_operands = 0 : i64, tpu.core_type = #tpu.core_type<tc>, window_params = [{transform_indices = @transform_0, window_bounds = array<i64: 128, 256>}, {pipeline_mode = #tpu.pipeline_mode<synchronous>, transform_indices = @transform_1, window_bounds = array<i64: 8, 128>}, {pipeline_mode = #tpu.pipeline_mode<synchronous>, transform_indices = @transform_2, window_bounds = array<i64: 8, 1>}, {pipeline_mode = #tpu.pipeline_mode<synchronous>, transform_indices = @transform_3, window_bounds = array<i64: 8, 8>}, {pipeline_mode = #tpu.pipeline_mode<synchronous>, transform_indices = @transform_4, window_bounds = array<i64: 8, 1>}, {transform_indices = @transform_5, window_bounds = array<i64: 8, 256>}]} {
    %c0 = arith.constant 0 : index
    %c0_0 = arith.constant 0 : index
    %0 = vector.load %arg2[%c0, %c0_0] : memref<8x128xbf16, #tpu.memory_space<vmem>>, vector<8x128xbf16>
    %c0_1 = arith.constant 0 : index
    %c0_2 = arith.constant 0 : index
    %1 = vector.load %arg1[%c0_1, %c0_2] : memref<128x256xbf16, #tpu.memory_space<vmem>>, vector<128x256xbf16>
    %cst = arith.constant dense<0.000000e+00> : vector<8x256xf32>
    %2 = tpu.matmul %0, %1, %cst {dimension_numbers = #tpu.dot_dimension_numbers<[1], [0], [0], [1], [0, 0, 1, 1], [], []>} : vector<8x128xbf16>, vector<128x256xbf16>, vector<8x256xf32> -> vector<8x256xf32>
    %c0_3 = arith.constant 0 : index
    %c0_4 = arith.constant 0 : index
    %3 = vector.load %arg3[%c0_3, %c0_4] : memref<8x1xf32, #tpu.memory_space<vmem>>, vector<8x1xf32>
    %4 = vector.broadcast %3 : vector<8x1xf32> to vector<8x256xf32>
    %5 = arith.addf %2, %4 : vector<8x256xf32>
    %cst_5 = arith.constant 0.000000e+00 : f32
    %6 = vector.broadcast %cst_5 : f32 to vector<8x256xf32>
    %7 = arith.maximumf %5, %6 : vector<8x256xf32>
    %c0_6 = arith.constant 0 : index
    %c0_7 = arith.constant 0 : index
    %8 = vector.load %arg4[%c0_6, %c0_7] : memref<8x8xbf16, #tpu.memory_space<vmem>>, vector<8x8xbf16>
    %9 = arith.truncf %7 : vector<8x256xf32> to vector<8x256xbf16>
    %cst_8 = arith.constant dense<0.000000e+00> : vector<8x256xf32>
    %10 = tpu.matmul %8, %9, %cst_8 {dimension_numbers = #tpu.dot_dimension_numbers<[1], [0], [0], [1], [0, 0, 1, 1], [], []>} : vector<8x8xbf16>, vector<8x256xbf16>, vector<8x256xf32> -> vector<8x256xf32>
    %c0_9 = arith.constant 0 : index
    %c0_10 = arith.constant 0 : index
    %11 = vector.load %arg5[%c0_9, %c0_10] : memref<8x1xf32, #tpu.memory_space<vmem>>, vector<8x1xf32>
    %12 = vector.broadcast %11 : vector<8x1xf32> to vector<8x256xf32>
    %13 = arith.addf %10, %12 : vector<8x256xf32>
    %c0_11 = arith.constant 0 : index
    %c0_12 = arith.constant 0 : index
    %14 = vector.load %arg6[%c0_11, %c0_12] : memref<8x256xf32, #tpu.memory_space<vmem>>, vector<8x256xf32>
    tpu.vector_store %arg6[%c0_11, %c0_12], %13 {strides = array<i32>} : memref<8x256xf32, #tpu.memory_space<vmem>>, vector<8x256xf32>,
    return
  }
  func.func @transform_0(%arg0: i32) -> (i32, i32) {
    %c0_i32 = arith.constant 0 : i32
    %c0_i32_0 = arith.constant 0 : i32
    return %c0_i32, %arg0 : i32, i32
  }
  func.func @transform_1(%arg0: i32) -> (i32, i32) {
    %c0_i32 = arith.constant 0 : i32
    %c0_i32_0 = arith.constant 0 : i32
    %c0_i32_1 = arith.constant 0 : i32
    return %c0_i32, %c0_i32_0 : i32, i32
  }
  func.func @transform_2(%arg0: i32) -> (i32, i32) {
    %c0_i32 = arith.constant 0 : i32
    %c0_i32_0 = arith.constant 0 : i32
    %c0_i32_1 = arith.constant 0 : i32
    return %c0_i32, %c0_i32_0 : i32, i32
  }
  func.func @transform_3(%arg0: i32) -> (i32, i32) {
    %c0_i32 = arith.constant 0 : i32
    %c0_i32_0 = arith.constant 0 : i32
    %c0_i32_1 = arith.constant 0 : i32
    return %c0_i32, %c0_i32_0 : i32, i32
  }
  func.func @transform_4(%arg0: i32) -> (i32, i32) {
    %c0_i32 = arith.constant 0 : i32
    %c0_i32_0 = arith.constant 0 : i32
    %c0_i32_1 = arith.constant 0 : i32
    return %c0_i32, %c0_i32_0 : i32, i32
  }
  func.func @transform_5(%arg0: i32) -> (i32, i32) {
    %c0_i32 = arith.constant 0 : i32
    %c0_i32_0 = arith.constant 0 : i32
    return %c0_i32, %arg0 : i32, i32
  }
}

</mosaic_0001>

<bundles_post_ra>
// kernel: objectiveness_head_forward.1
= control target key start
LH: loop header
LB: loop body
LE: loop exit
PB: predicated region body
PF: predicated region fallthrough
CT: control target
= control target key end

     0   :  { %s742_s18 = smov 0   ;;  %s744_s19 = smov 0   ;;  %s858_s0 = inlined_call_operand.vmem [shape: bf16[128,512], index: 0, kind: input, shape index: {}]   ;;  %s859_s1 = inlined_call_operand.vmem [shape: bf16[8,128], index: 1, kind: input, shape index: {}]   ;;  %s860_s2 = inlined_call_operand.vmem [shape: f32[8,1], index: 2, kind: input, shape index: {}]   ;;  %s861_s3 = inlined_call_operand.vmem [shape: bf16[8,8], index: 3, kind: input, shape index: {}]   ;;  %s862_s4 = inlined_call_operand.vmem [shape: f32[8,1], index: 4, kind: input, shape index: {}]   ;;  %s863_s5 = inlined_call_operand.vmem [shape: f32[8,512], index: 5, kind: output, shape index: {}]  }
   0x1   :  { %s746_s20 = smov 0  }
   0x2 LB: > { %s565_s21 = sadd.s32 4294967295, %s709_s20   ;;  %s759_s22 = sadd.s32 1, %s709_s20   ;;  %s709_s20 = sphi %s746_s20, %s866_s20   ;;  %s705_s19 = sphi %s744_s19, %s865_s19   ;;  %s701_s18 = sphi %s742_s18, %s864_s18  }
   0x3   : > { %s19_s23 = ssub.s32 %s709_s20, %s759_s22  ;;  %s22_s24 = sadd.s32 1, %s705_s19 }
   0x4   : > { %p20_p0 = scmp.eq.s32.totalorder %s19_s23, 0  ;;  %p29_p1 = scmp.ne.s32.totalorder %s705_s19, %s701_s18 }
   0x5   : > { %p30_p2 = scmp.eq.s32.totalorder %s709_s20, 0  ;;  %p568_p4 = scmp.ge.s32.totalorder %s709_s20, 2 }
   0x6   : > { %s768_s25 = scalar_select %p20_p0, %s705_s19, %s22_s24  }
   0x7   : > { %p31_p3 = por %p30_p2, %p29_p1  ;;  %177 = sbr.rel (%p568_p4) target bundleno = 32 (0x20), region = 32 }
   0xc   : > { %180 = sbr.rel (!%p31_p3) target bundleno = 32 (0x20), region = 36  ;;  %s182_s26 = sand.u32 (%p31_p3), 1, %s705_s19  }
   0xd   : > { %s644_s27 = sshll.u32 (%p31_p3), %s709_s20, 3  ;;  %s569_s28 = sshll.u32 (%p31_p3), %s182_s26, 7 }
   0xe   : > { %s776_s6 = scalar_lea.vmem (%p31_p3), %s858_s0, %s644_s27  ;;  %s184_s7 = scalar_lea.vmem (%p31_p3), [#allocation2], %s569_s28 }
   0xf   : > { %v246_v0 = vld [vmem:[%s776_s6] sm:$0xff] (%p31_p3)  ;;  %v248_v1 = vld [vmem:[%s776_s6 + $0x10] sm:$0xff] (%p31_p3) }
  0x10   : > { %v250_v2 = vld [vmem:[%s776_s6 + $0x20] sm:$0xff] (%p31_p3)  ;;  %247 = vst [vmem:[%s184_s7] sm:$0xff] (%p31_p3), %v246_v0  ;;  %v252_v3 = vld [vmem:[%s776_s6 + $0x30] sm:$0xff] (%p31_p3) }
  0x11   : > { %249 = vst [vmem:[%s184_s7 + $0x8] sm:$0xff] %v248_v1  ;;  %v254_v4 = vld [vmem:[%s776_s6 + $0x40] sm:$0xff]  ;;  %v256_v5 = vld [vmem:[%s776_s6 + $0x50] sm:$0xff] }
  0x12   : > { %251 = vst [vmem:[%s184_s7 + $0x10] sm:$0xff] %v250_v2  ;;  %v258_v6 = vld [vmem:[%s776_s6 + $0x60] sm:$0xff]  ;;  %v260_v7 = vld [vmem:[%s776_s6 + $0x70] sm:$0xff] }
  0x13   : > { %253 = vst [vmem:[%s184_s7 + $0x18] sm:$0xff] %v252_v3  ;;  %v262_v8 = vld [vmem:[%s776_s6 + $0x80] sm:$0xff]  ;;  %v264_v9 = vld [vmem:[%s776_s6 + $0x90] sm:$0xff] }
  0x14   : > { %255 = vst [vmem:[%s184_s7 + $0x20] sm:$0xff] %v254_v4  ;;  %v266_v10 = vld [vmem:[%s776_s6 + $0xa0] sm:$0xff]  ;;  %v268_v11 = vld [vmem:[%s776_s6 + $0xb0] sm:$0xff] }
  0x15   : > { %257 = vst [vmem:[%s184_s7 + $0x28] sm:$0xff] %v256_v5  ;;  %v270_v12 = vld [vmem:[%s776_s6 + $0xc0] sm:$0xff]  ;;  %v272_v13 = vld [vmem:[%s776_s6 + $0xd0] sm:$0xff] }
  0x16   : > { %259 = vst [vmem:[%s184_s7 + $0x30] sm:$0xff] %v258_v6  ;;  %v274_v14 = vld [vmem:[%s776_s6 + $0xe0] sm:$0xff]  ;;  %v276_v15 = vld [vmem:[%s776_s6 + $0xf0] sm:$0xff] }
  0x17   : > { %261 = vst [vmem:[%s184_s7 + $0x38] sm:$0xff] %v260_v7 }
  0x18   : > { %263 = vst [vmem:[%s184_s7 + $0x40] sm:$0xff] %v262_v8 }
  0x19   : > { %265 = vst [vmem:[%s184_s7 + $0x48] sm:$0xff] %v264_v9 }
  0x1a   : > { %267 = vst [vmem:[%s184_s7 + $0x50] sm:$0xff] %v266_v10 }
  0x1b   : > { %269 = vst [vmem:[%s184_s7 + $0x58] sm:$0xff] %v268_v11 }
  0x1c   : > { %271 = vst [vmem:[%s184_s7 + $0x60] sm:$0xff] %v270_v12 }
  0x1d   : > { %273 = vst [vmem:[%s184_s7 + $0x68] sm:$0xff] %v272_v13 }
  0x1e   : > { %275 = vst [vmem:[%s184_s7 + $0x70] sm:$0xff] %v274_v14 }
  0x1f   : > { %277 = vst [vmem:[%s184_s7 + $0x78] sm:$0xff] %v276_v15 }
  0x20 PF: > { %p572_p5 = scmp.ge.s32.totalorder %s709_s20, 1  ;;  %p282_p6 = scmp.lt.s32.totalorder %s709_s20, 3 }
  0x22   : > { %p283_p7 = pnand %p572_p5, %p282_p6 }
  0x23   : > { %s289_s8 = sand.u32 (!%p283_p7), 1, %s701_s18   ;;  %s574_s23 = sshll.u32 (!%p283_p7), %s565_s21, 1 }
  0x24   : > { %286 = sbr.rel (%p283_p7) target bundleno = 352 (0x160), region = 74  ;;  %s573_s9 = sshll.u32 (!%p283_p7), %s289_s8, 7 }
  0x25   : > { %s797_s10 = scalar_lea.vmem (!%p283_p7), [#allocation2], %s573_s9  ;;  %p318_p8 = scmp.lt.s32.totalorder (!%p283_p7), %s574_s23, 3 }
  0x29   : > { %v634_v16 = vld [vmem:[%s797_s10 + $0x70] sm:$0xf]  ;;  %v660_v17 = vld [vmem:[%s797_s10 + $0x74] sm:$0xf0]  ;;  %v659_v18 = vld [vmem:[%s797_s10 + $0x74] sm:$0xf] }
  0x2a   : > { %v635_v19 = vor.u32 %v660_v17, %v634_v16  ;;  %v636_v20 = vld [vmem:[%s797_s10 + $0x78] sm:$0xf0]  ;;  %v626_v21 = vld [vmem:[%s797_s10 + $0x60] sm:$0xf]  ;;  %v658_v22 = vld [vmem:[%s797_s10 + $0x64] sm:$0xf0] }
  0x2b   : > { %v639_v23 = vor.u32 %v659_v18, %v636_v20  ;;  %v657_v24 = vld [vmem:[%s797_s10 + $0x64] sm:$0xf]  ;;  %v628_v25 = vld [vmem:[%s797_s10 + $0x68] sm:$0xf0]  ;;  %v627_v26 = vor.u32 %v658_v22, %v626_v21  ;;  %v618_v28 = vld [vmem:[%s797_s10 + $0x50] sm:$0xf] }
  0x2c   : > { %427 = vmatpush.bf16.msra.mxu0 %v635_v19  ;;  %v631_v27 = vor.u32 %v657_v24, %v628_v25  ;;  %v656_v29 = vld [vmem:[%s797_s10 + $0x54] sm:$0xf0]  ;;  %v655_v30 = vld [vmem:[%s797_s10 + $0x54] sm:$0xf]  ;;  %v620_v31 = vld [vmem:[%s797_s10 + $0x58] sm:$0xf0] }
  0x2d   : > { %440 = vmatpush.bf16.msra.mxu1 %v639_v23  ;;  %v619_v32 = vor.u32 %v656_v29, %v618_v28  ;;  %v623_v33 = vor.u32 %v655_v30, %v620_v31  ;;  %v610_v34 = vld [vmem:[%s797_s10 + $0x40] sm:$0xf]  ;;  %v654_v35 = vld [vmem:[%s797_s10 + $0x44] sm:$0xf0]  ;;  %v653_v36 = vld [vmem:[%s797_s10 + $0x44] sm:$0xf] }
  0x2e   : > { %v612_v37 = vld [vmem:[%s797_s10 + $0x48] sm:$0xf0]  ;;  %v611_v38 = vor.u32 %v654_v35, %v610_v34  ;;  %v341_v39 = vld [vmem:[%s860_s2] sm:$0xff]  ;;  %v602_v41 = vld [vmem:[%s797_s10 + $0x30] sm:$0xf]  ;;  %v711_v43 = vmov 0  }
  0x2f   : > { %v615_v40 = vor.u32 %v653_v36, %v612_v37  ;;  %v652_v42 = vld [vmem:[%s797_s10 + $0x34] sm:$0xf0]  ;;  %686 = vset.pattern.permute.xlu0 %v711_v43  ;;  %v651_v44 = vld [vmem:[%s797_s10 + $0x34] sm:$0xf]  ;;  %v604_v45 = vld [vmem:[%s797_s10 + $0x38] sm:$0xf0] }
  0x30   : > { %428 = vmatpush.bf16.msra.mxu0 %v627_v26  ;;  %344 = vperm.xlu0 %686, %v341_v39   ;;  %v603_v46 = vor.u32 %v652_v42, %v602_v41  ;;  %v607_v47 = vor.u32 %v651_v44, %v604_v45  ;;  %v594_v48 = vld [vmem:[%s797_s10 + $0x20] sm:$0xf]  ;;  %v650_v49 = vld [vmem:[%s797_s10 + $0x24] sm:$0xf0]  ;;  %v649_v50 = vld [vmem:[%s797_s10 + $0x24] sm:$0xf] }
  0x31   : > { %441 = vmatpush.bf16.msra.mxu1 %v631_v27  ;;  %v596_v51 = vld [vmem:[%s797_s10 + $0x28] sm:$0xf0]  ;;  %v458_v52 = vld [vmem:[%s862_s4] sm:$0xff]  ;;  %v595_v53 = vor.u32 %v650_v49, %v594_v48  ;;  %v586_v55 = vld [vmem:[%s797_s10 + $0x10] sm:$0xf]  ;;  %vm468_vm0 = vcmask 1043456  }
  0x32   : > { %v599_v54 = vor.u32 %v649_v50, %v596_v51  ;;  %v648_v56 = vld [vmem:[%s797_s10 + $0x14] sm:$0xf0]  ;;  %v647_v57 = vld [vmem:[%s797_s10 + $0x14] sm:$0xf]  ;;  %v588_v58 = vld [vmem:[%s797_s10 + $0x18] sm:$0xf0] }
  0x33   : > { %v587_v59 = vor.u32 %v648_v56, %v586_v55  ;;  %v591_v60 = vor.u32 %v647_v57, %v588_v58  ;;  %v578_v61 = vld [vmem:[%s797_s10] sm:$0xf]  ;;  %v646_v62 = vld [vmem:[%s797_s10 + $0x4] sm:$0xf0]  ;;  %v645_v63 = vld [vmem:[%s797_s10 + $0x4] sm:$0xf] }
  0x34   : > { %429 = vmatpush.bf16.msra.mxu0 %v619_v32  ;;  %v580_v0 = vld [vmem:[%s797_s10 + $0x8] sm:$0xf0]  ;;  %v579_v1 = vor.u32 %v646_v62, %v578_v61  ;;  %v324_v3 = vld [vmem:[%s859_s1] sm:$0xf]  ;;  %vm464_vm1 = vcmask 64512   ;;  %s868_s23 = smov (!%p318_p8, %s574_s23), 3 }
  0x35   : > { %442 = vmatpush.bf16.msra.mxu1 %v623_v33  ;;  %v583_v2 = vor.u32 %v645_v63, %v580_v0  ;;  %v455_v16 = vld [vmem:[%s861_s3] sm:$0xf]  ;;  %s575_s24 = sshll.u32 %s868_s23, 3 }
  0x36   : > { %s321_s28 = scalar_lea.vmem %s863_s5, %s575_s24 }
  0x38   : > { %430 = vmatpush.bf16.msra.mxu0 %v611_v38  ;;  %461 = vperm.xlu0 %686, %v458_v52  }
  0x39   : > { %443 = vmatpush.bf16.msra.mxu1 %v615_v40 }
  0x3c   : > { %431 = vmatpush.bf16.msra.mxu0 %v603_v46 }
  0x3d   : > { %444 = vmatpush.bf16.msra.mxu1 %v607_v47 }
  0x40   : > { %432 = vmatpush.bf16.msra.mxu0 %v595_v53 }
  0x41   : > { %445 = vmatpush.bf16.msra.mxu1 %v599_v54 }
  0x44   : > { %433 = vmatpush.bf16.msra.mxu0 %v587_v59 }
  0x45   : > { %446 = vmatpush.bf16.msra.mxu1 %v591_v60 }
  0x48   : > { %434 = vmatpush.bf16.msra.mxu0 %v579_v1 }
  0x49   : > { %447 = vmatpush.bf16.msra.mxu1 %v583_v2 }
  0x4b   : > { %435 = vmatmul.bf16.vlgmr.msra.gmra.mxu0 %v324_v3 }
  0x4c   : > { %448 = vmatmul.bf16.vlgmr.msra.gmra.mxu1 %v324_v3 }
  0xa2   : > { %v345_v4 = vpop.permute.xlu0 %344 }
  0xaa   : > { %v462_v18 = vpop.permute.xlu0 %461 }
  0xc8   : > { %v436_v5 = vpop.f32.mrf.mxu0 }
  0xc9   : > { %v437_v6 = vadd.f32 %v436_v5, %v345_v4  ;;  %v449_v7 = vpop.f32.mrf.mxu1 }
  0xca   : > { %v450_v8 = vadd.f32 %v449_v7, %v345_v4 }
  0xcb   : > { %v453_v9 = vmax.f32 %v437_v6, 0.0 }
  0xcc   : > { %v454_v10 = vmax.f32 %v450_v8, 0.0 }
  0xcd   : > { %v456_v11 = vpack.c.bf16 %v453_v9, %v453_v9 }
  0xce   : > { %v457_v12 = vpack.c.bf16 %v454_v10, %v454_v10 }
  0xcf   : > { %v470_v13 = vsel %vm468_vm0, %v456_v11, 0 }
  0xd0   : > { %v438_v14 = vpop.f32.mrf.mxu0  ;;  %482 = vmatpush.bf16.msra.mxu2 %v470_v13  ;;  %v473_v15 = vsel %vm468_vm0, %v457_v12, 0 }
  0xd1   : > { %v451_v17 = vpop.f32.mrf.mxu1  ;;  %495 = vmatpush.bf16.msra.mxu3 %v473_v15 }
  0xd3   : > { %640 = vmatmul.msk.bf16.vlgmr.msra.gmra.mxu2 %vm464_vm1, %v455_v16 }
  0xd4   : > { %641 = vmatmul.msk.bf16.vlgmr.msra.gmra.mxu3 %vm464_vm1, %v455_v16 }
 0x156   : > { %v484_v19 = vpop.f32.mrf.mxu2 }
 0x157   : > { %v485_v20 = vadd.f32 %v484_v19, %v462_v18  ;;  %v497_v21 = vpop.f32.mrf.mxu3 }
 0x158   : > { %v498_v22 = vadd.f32 %v497_v21, %v462_v18 }
 0x159   : > { %501 = vst [vmem:[%s321_s28] sm:$0xff] %v485_v20 }
 0x15a   : > { %502 = vst [vmem:[%s321_s28 + $0x8] sm:$0xff] %v498_v22 }
 0x15e   : > { %v486_v23 = vpop.f32.mrf.mxu2 }
 0x15f   : > { %v499_v24 = vpop.f32.mrf.mxu3 }
 0x160 PF: > { %p12_p9 = scmp.ge.s32.totalorder %s759_s22, 4   ;;  %s864_s18 = smov %s705_s19 }
 0x161   : > { %s865_s19 = smov %s768_s25  ;;  %s866_s20 = smov %s759_s22 }
 0x162   :  { %14 = sbr.rel (!%p12_p9) target bundleno = 2 (0x2), region = 113 }

</bundles_post_ra>
